<compile_context>
chip_gen: v7x
topology: tpu7x:2x2x1
jax: 0.10.0
libtpu: 0.0.40
codegen_flags: <defaults>
</compile_context>

<pallas_src>
import jax
import jax.numpy as jnp
import numpy as np
from jax import lax
from jax.experimental import pallas as pl
from jax.experimental.pallas import tpu as pltpu


def _upsample_conv_kernel(x_ref, w_ref, b_ref, o_ref):
    """One row-tile of the 3x3, stride-1, pad-1 conv on the upsampled image.

    x_ref : (TH + 2, Wp*C)   padded upsampled input rows (1-row halo each side),
                             lanes = (width-pixel, channel) flattened.
    w_ref : (9*Wo*C, Wo*C)   block-diagonal per-tap weights, tap-major rows.
    b_ref : (1, Wo*C)        conv bias broadcast along the lane axis.
    o_ref : (TH, Wo*C)       lane-dense output tile.
    """
    TH, WoC = o_ref.shape
    WpC = x_ref.shape[1]
    C = (WpC - WoC) // 2            # Wp*C - Wo*C == 2*C

    xv = x_ref[...]                 # (TH+2, WpC) -- a few vregs, sliced 9x below
    acc = jnp.zeros((TH, WoC), jnp.float32)
    for kh in range(3):
        for kw in range(3):
            t = kh * 3 + kw
            tap = xv[kh:kh + TH, kw * C:kw * C + WoC]            # (TH, WoC)
            wk = w_ref[t * WoC:(t + 1) * WoC, :]                 # (WoC, WoC)
            acc = acc + jnp.dot(tap, wk, preferred_element_type=jnp.float32)
    o_ref[...] = (acc + b_ref[...]).astype(o_ref.dtype)


def _pick_row_tile(Ho, Wo, target_rows=1024):
    """Largest divisor TH of Ho with TH*Wo output pixels <= target (~512-2048)."""
    best = 1
    for th in range(1, Ho + 1):
        if Ho % th == 0 and th * Wo <= target_rows:
            best = th
    return best


def up_sample_forward(x_nchw, w, b):
    """Upsample(2x, nearest) + Conv2d(C, C, k=3, s=1, p=1).  x: NCHW, w: OIHW."""
    N, C, H, W = x_nchw.shape
    Ho, Wo = 2 * H, 2 * W
    Wp = Wo + 2
    WoC, WpC = Wo * C, Wp * C

    # ---- glue (XLA): nearest 2x upsample, zero-pad, lane-flatten -------------
    x_nhwc = jnp.transpose(x_nchw, (0, 2, 3, 1))                   # (N, H, W, C)
    x_up = jnp.repeat(jnp.repeat(x_nhwc, 2, axis=1), 2, axis=2)    # (N, Ho, Wo, C)
    xp = jnp.pad(x_up, ((0, 0), (1, 1), (1, 1), (0, 0)))           # (N, Ho+2, Wp, C)
    xp_rows = xp.reshape(N, Ho + 2, WpC)                           # lanes = (w, c)

    # ---- row tiling with a 1-row halo on each side ---------------------------
    TH = _pick_row_tile(Ho, Wo)
    RT = Ho // TH
    # Overlapping halo chunks (2 duplicated rows per TH rows; cheap vs 9x im2col).
    # Note: the last tile is always full since TH divides Ho exactly.
    chunks = jnp.stack(
        [xp_rows[:, r * TH:r * TH + TH + 2, :] for r in range(RT)], axis=1)
    chunks = chunks.reshape(N * RT, TH + 2, WpC)

    # ---- per-tap block-diagonal weights so channels contract in the
    #      lane-flattened (pixel, channel) layout ------------------------------
    # PyTorch (Cout, Cin, KH, KW) -> (KH, KW, Cin, Cout)
    w_taps = jnp.transpose(w, (2, 3, 1, 0)).astype(jnp.float32)
    eye = jnp.eye(Wo, dtype=jnp.float32)
    # B[t, u*Cin+ci, v*Cout+co] = eye[u, v] * w_taps[kh, kw, ci, co]
    w_bd = jnp.einsum("uv,hkio->hkuivo", eye, w_taps).reshape(9 * WoC, WoC)
    b_lane = jnp.tile(b.astype(jnp.float32), Wo).reshape(1, WoC)
    # TODO(synk): for very large Wo*C, add a column tile TW so the block-diagonal
    # weight stays O(128..512)^2 (with a W halo); not needed at these shapes.

    # ---- VMEM budget: double-buffered in/out tiles + resident weights --------
    tile_bytes = 4 * (2 * ((TH + 2) * WpC + TH * WoC) + 9 * WoC * WoC + WoC)
    vmem_limit = int(min(32 * 2**20, max(8 * 2**20, 4 * tile_bytes)))

    out3d = pl.pallas_call(
        _upsample_conv_kernel,
        out_shape=jax.ShapeDtypeStruct((N * RT, TH, WoC), x_nchw.dtype),
        grid=(N * RT,),
        in_specs=[
            pl.BlockSpec((None, TH + 2, WpC), lambda g: (g, 0, 0)),
            pl.BlockSpec((9 * WoC, WoC), lambda g: (0, 0)),   # resident weights
            pl.BlockSpec((1, WoC), lambda g: (0, 0)),         # resident bias
        ],
        out_specs=pl.BlockSpec((None, TH, WoC), lambda g: (g, 0, 0)),
        compiler_params=pltpu.CompilerParams(
            dimension_semantics=("parallel",),
            vmem_limit_bytes=vmem_limit,
        ),
    )(chunks, w_bd, b_lane)

    out = out3d.reshape(N, Ho, Wo, C)
    return jnp.transpose(out, (0, 3, 1, 2))


def _reference(x, w, b):
    xu = jnp.repeat(jnp.repeat(x, 2, axis=2), 2, axis=3)           # NCHW nearest 2x
    y = lax.conv_general_dilated(
        xu, w, window_strides=(1, 1), padding=[(1, 1), (1, 1)],
        dimension_numbers=("NCHW", "OIHW", "NCHW"),
        precision=lax.Precision.HIGHEST)
    return y + b.reshape(1, -1, 1, 1)


if __name__ == "__main__":
    key = jax.random.PRNGKey(0)
    k_x, k_w, k_b = jax.random.split(key, 3)

    N, C, H, W = 2, 4, 16, 16              # ch_in = 4
    x = jax.random.normal(k_x, (N, C, H, W), dtype=jnp.float32)
    # Conv2d(ch_in, ch_in, kernel_size=3, stride=1, padding=1) parameters.
    w = jax.random.normal(k_w, (C, C, 3, 3), dtype=jnp.float32) * 0.1
    b = jax.random.normal(k_b, (C,), dtype=jnp.float32) * 0.1

    out = jax.block_until_ready(up_sample_forward(x, w, b))
    assert out.shape == (N, C, 2 * H, 2 * W), out.shape

    ref = jax.block_until_ready(_reference(x, w, b))
    np.testing.assert_allclose(np.asarray(out), np.asarray(ref),
                               rtol=1e-5, atol=1e-5)
    print("KERNEL_OK")
</pallas_src>

<mosaic_0001>
module attributes {stable_mosaic.version = 11 : i64} {
  func.func @_upsample_conv_kernel(%arg0: i32, %arg1: memref<1x34x136xf32, #tpu.memory_space<vmem>>, %arg2: memref<1152x128xf32, #tpu.memory_space<vmem>>, %arg3: memref<1x128xf32, #tpu.memory_space<vmem>>, %arg4: memref<1x32x128xf32, #tpu.memory_space<vmem>>) attributes {dimension_semantics = [#tpu.dimension_semantics<parallel>], iteration_bounds = array<i64: 2>, scalar_prefetch = 0 : i64, scratch_operands = 0 : i64, tpu.core_type = #tpu.core_type<tc>, window_params = [{transform_indices = @transform_0, window_bounds = array<i64: 1, 34, 136>}, {pipeline_mode = #tpu.pipeline_mode<synchronous>, transform_indices = @transform_1, window_bounds = array<i64: 1152, 128>}, {pipeline_mode = #tpu.pipeline_mode<synchronous>, transform_indices = @transform_2, window_bounds = array<i64: 1, 128>}, {transform_indices = @transform_3, window_bounds = array<i64: 1, 32, 128>}]} {
    %c0 = arith.constant 0 : index
    %c0_0 = arith.constant 0 : index
    %c0_1 = arith.constant 0 : index
    %0 = vector.load %arg1[%c0, %c0_0, %c0_1] : memref<1x34x136xf32, #tpu.memory_space<vmem>>, vector<1x34x136xf32>
    %1 = vector.shape_cast %0 : vector<1x34x136xf32> to vector<34x136xf32>
    %cst = arith.constant 0.000000e+00 : f32
    %2 = vector.broadcast %cst : f32 to vector<32x128xf32>
    %3 = vector.extract_strided_slice %1 {offsets = [0, 0], sizes = [32, 128], strides = [1, 1]} : vector<34x136xf32> to vector<32x128xf32>
    %c0_2 = arith.constant 0 : index
    %c0_3 = arith.constant 0 : index
    %4 = vector.load %arg2[%c0_2, %c0_3] : memref<1152x128xf32, #tpu.memory_space<vmem>>, vector<128x128xf32>
    %cst_4 = arith.constant dense<0.000000e+00> : vector<32x128xf32>
    %5 = tpu.matmul %3, %4, %cst_4 {dimension_numbers = #tpu.dot_dimension_numbers<[1], [0], [0], [1], [0, 0, 1, 1], [], []>} : vector<32x128xf32>, vector<128x128xf32>, vector<32x128xf32> -> vector<32x128xf32>
    %6 = arith.addf %2, %5 : vector<32x128xf32>
    %7 = vector.extract_strided_slice %1 {offsets = [0, 4], sizes = [32, 128], strides = [1, 1]} : vector<34x136xf32> to vector<32x128xf32>
    %c128 = arith.constant 128 : index
    %c0_5 = arith.constant 0 : index
    %8 = vector.load %arg2[%c128, %c0_5] : memref<1152x128xf32, #tpu.memory_space<vmem>>, vector<128x128xf32>
    %cst_6 = arith.constant dense<0.000000e+00> : vector<32x128xf32>
    %9 = tpu.matmul %7, %8, %cst_6 {dimension_numbers = #tpu.dot_dimension_numbers<[1], [0], [0], [1], [0, 0, 1, 1], [], []>} : vector<32x128xf32>, vector<128x128xf32>, vector<32x128xf32> -> vector<32x128xf32>
    %10 = arith.addf %6, %9 : vector<32x128xf32>
    %11 = vector.extract_strided_slice %1 {offsets = [0, 8], sizes = [32, 128], strides = [1, 1]} : vector<34x136xf32> to vector<32x128xf32>
    %c256 = arith.constant 256 : index
    %c0_7 = arith.constant 0 : index
    %12 = vector.load %arg2[%c256, %c0_7] : memref<1152x128xf32, #tpu.memory_space<vmem>>, vector<128x128xf32>
    %cst_8 = arith.constant dense<0.000000e+00> : vector<32x128xf32>
    %13 = tpu.matmul %11, %12, %cst_8 {dimension_numbers = #tpu.dot_dimension_numbers<[1], [0], [0], [1], [0, 0, 1, 1], [], []>} : vector<32x128xf32>, vector<128x128xf32>, vector<32x128xf32> -> vector<32x128xf32>
    %14 = arith.addf %10, %13 : vector<32x128xf32>
    %15 = vector.extract_strided_slice %1 {offsets = [1, 0], sizes = [32, 128], strides = [1, 1]} : vector<34x136xf32> to vector<32x128xf32>
    %c384 = arith.constant 384 : index
    %c0_9 = arith.constant 0 : index
    %16 = vector.load %arg2[%c384, %c0_9] : memref<1152x128xf32, #tpu.memory_space<vmem>>, vector<128x128xf32>
    %cst_10 = arith.constant dense<0.000000e+00> : vector<32x128xf32>
    %17 = tpu.matmul %15, %16, %cst_10 {dimension_numbers = #tpu.dot_dimension_numbers<[1], [0], [0], [1], [0, 0, 1, 1], [], []>} : vector<32x128xf32>, vector<128x128xf32>, vector<32x128xf32> -> vector<32x128xf32>
    %18 = arith.addf %14, %17 : vector<32x128xf32>
    %19 = vector.extract_strided_slice %1 {offsets = [1, 4], sizes = [32, 128], strides = [1, 1]} : vector<34x136xf32> to vector<32x128xf32>
    %c512 = arith.constant 512 : index
    %c0_11 = arith.constant 0 : index
    %20 = vector.load %arg2[%c512, %c0_11] : memref<1152x128xf32, #tpu.memory_space<vmem>>, vector<128x128xf32>
    %cst_12 = arith.constant dense<0.000000e+00> : vector<32x128xf32>
    %21 = tpu.matmul %19, %20, %cst_12 {dimension_numbers = #tpu.dot_dimension_numbers<[1], [0], [0], [1], [0, 0, 1, 1], [], []>} : vector<32x128xf32>, vector<128x128xf32>, vector<32x128xf32> -> vector<32x128xf32>
    %22 = arith.addf %18, %21 : vector<32x128xf32>
    %23 = vector.extract_strided_slice %1 {offsets = [1, 8], sizes = [32, 128], strides = [1, 1]} : vector<34x136xf32> to vector<32x128xf32>
    %c640 = arith.constant 640 : index
    %c0_13 = arith.constant 0 : index
    %24 = vector.load %arg2[%c640, %c0_13] : memref<1152x128xf32, #tpu.memory_space<vmem>>, vector<128x128xf32>
    %cst_14 = arith.constant dense<0.000000e+00> : vector<32x128xf32>
    %25 = tpu.matmul %23, %24, %cst_14 {dimension_numbers = #tpu.dot_dimension_numbers<[1], [0], [0], [1], [0, 0, 1, 1], [], []>} : vector<32x128xf32>, vector<128x128xf32>, vector<32x128xf32> -> vector<32x128xf32>
    %26 = arith.addf %22, %25 : vector<32x128xf32>
    %27 = vector.extract_strided_slice %1 {offsets = [2, 0], sizes = [32, 128], strides = [1, 1]} : vector<34x136xf32> to vector<32x128xf32>
    %c768 = arith.constant 768 : index
    %c0_15 = arith.constant 0 : index
    %28 = vector.load %arg2[%c768, %c0_15] : memref<1152x128xf32, #tpu.memory_space<vmem>>, vector<128x128xf32>
    %cst_16 = arith.constant dense<0.000000e+00> : vector<32x128xf32>
    %29 = tpu.matmul %27, %28, %cst_16 {dimension_numbers = #tpu.dot_dimension_numbers<[1], [0], [0], [1], [0, 0, 1, 1], [], []>} : vector<32x128xf32>, vector<128x128xf32>, vector<32x128xf32> -> vector<32x128xf32>
    %30 = arith.addf %26, %29 : vector<32x128xf32>
    %31 = vector.extract_strided_slice %1 {offsets = [2, 4], sizes = [32, 128], strides = [1, 1]} : vector<34x136xf32> to vector<32x128xf32>
    %c896 = arith.constant 896 : index
    %c0_17 = arith.constant 0 : index
    %32 = vector.load %arg2[%c896, %c0_17] : memref<1152x128xf32, #tpu.memory_space<vmem>>, vector<128x128xf32>
    %cst_18 = arith.constant dense<0.000000e+00> : vector<32x128xf32>
    %33 = tpu.matmul %31, %32, %cst_18 {dimension_numbers = #tpu.dot_dimension_numbers<[1], [0], [0], [1], [0, 0, 1, 1], [], []>} : vector<32x128xf32>, vector<128x128xf32>, vector<32x128xf32> -> vector<32x128xf32>
    %34 = arith.addf %30, %33 : vector<32x128xf32>
    %35 = vector.extract_strided_slice %1 {offsets = [2, 8], sizes = [32, 128], strides = [1, 1]} : vector<34x136xf32> to vector<32x128xf32>
    %c1024 = arith.constant 1024 : index
    %c0_19 = arith.constant 0 : index
    %36 = vector.load %arg2[%c1024, %c0_19] : memref<1152x128xf32, #tpu.memory_space<vmem>>, vector<128x128xf32>
    %cst_20 = arith.constant dense<0.000000e+00> : vector<32x128xf32>
    %37 = tpu.matmul %35, %36, %cst_20 {dimension_numbers = #tpu.dot_dimension_numbers<[1], [0], [0], [1], [0, 0, 1, 1], [], []>} : vector<32x128xf32>, vector<128x128xf32>, vector<32x128xf32> -> vector<32x128xf32>
    %38 = arith.addf %34, %37 : vector<32x128xf32>
    %c0_21 = arith.constant 0 : index
    %c0_22 = arith.constant 0 : index
    %39 = vector.load %arg3[%c0_21, %c0_22] : memref<1x128xf32, #tpu.memory_space<vmem>>, vector<1x128xf32>
    %40 = vector.broadcast %39 : vector<1x128xf32> to vector<32x128xf32>
    %41 = arith.addf %38, %40 : vector<32x128xf32>
    %c0_23 = arith.constant 0 : index
    %c0_24 = arith.constant 0 : index
    %c0_25 = arith.constant 0 : index
    %42 = vector.load %arg4[%c0_23, %c0_24, %c0_25] : memref<1x32x128xf32, #tpu.memory_space<vmem>>, vector<1x32x128xf32>
    %43 = vector.shape_cast %42 : vector<1x32x128xf32> to vector<32x128xf32>
    %44 = vector.shape_cast %41 : vector<32x128xf32> to vector<1x32x128xf32>
    tpu.vector_store %arg4[%c0_23, %c0_24, %c0_25], %44 {strides = array<i32>} : memref<1x32x128xf32, #tpu.memory_space<vmem>>, vector<1x32x128xf32>,
    return
  }
  func.func @transform_0(%arg0: i32) -> (i32, i32, i32) {
    %c0_i32 = arith.constant 0 : i32
    %c0_i32_0 = arith.constant 0 : i32
    %c0_i32_1 = arith.constant 0 : i32
    return %arg0, %c0_i32, %c0_i32_0 : i32, i32, i32
  }
  func.func @transform_1(%arg0: i32) -> (i32, i32) {
    %c0_i32 = arith.constant 0 : i32
    %c0_i32_0 = arith.constant 0 : i32
    %c0_i32_1 = arith.constant 0 : i32
    return %c0_i32, %c0_i32_0 : i32, i32
  }
  func.func @transform_2(%arg0: i32) -> (i32, i32) {
    %c0_i32 = arith.constant 0 : i32
    %c0_i32_0 = arith.constant 0 : i32
    %c0_i32_1 = arith.constant 0 : i32
    return %c0_i32, %c0_i32_0 : i32, i32
  }
  func.func @transform_3(%arg0: i32) -> (i32, i32, i32) {
    %c0_i32 = arith.constant 0 : i32
    %c0_i32_0 = arith.constant 0 : i32
    %c0_i32_1 = arith.constant 0 : i32
    return %arg0, %c0_i32, %c0_i32_0 : i32, i32, i32
  }
}

</mosaic_0001>

<bundles_post_ra>
// kernel: tpu_custom_call.1
= control target key start
LH: loop header
LB: loop body
LE: loop exit
PB: predicated region body
PF: predicated region fallthrough
CT: control target
= control target key end

     0   :  { %8 = vsyncpa [#allocation3], 0  ;;  %s2915_s0 = inlined_call_operand.vmem [shape: f32[2,34,136], index: 0, kind: input, shape index: {}]   ;;  %s2916_s1 = inlined_call_operand.hbm [shape: f32[1152,128], index: 1, kind: input, shape index: {}]   ;;  %s2917_s2 = inlined_call_operand.vmem [shape: f32[1,128], index: 2, kind: input, shape index: {}]   ;;  %s2918_s3 = inlined_call_operand.hbm [shape: f32[2,32,128], index: 3, kind: output, shape index: {}]  }
   0x1   :  { %9 = vsyncpa [#allocation4], 0 }
   0x2   :  { %11 = vsyncpa [#allocation4 + $0x1], 0  ;;  %s2610_s12 = smov 0   ;;  %s2612_s13 = smov 0  }
   0x3   :  { %s2614_s14 = smov 0   ;;  %s2616_s15 = smov 0  }
   0x4 LB: > { %s2631_s16 = sadd.s32 4294967295, %s2580_s15   ;;  %s1436_s17 = sadd.s32 4294967294, %s2580_s15   ;;  %s2580_s15 = sphi %s2616_s15, %s2934_s15   ;;  %s2576_s14 = sphi %s2614_s14, %s2933_s14   ;;  %s2572_s13 = sphi %s2612_s13, %s2932_s13   ;;  %s2568_s12 = sphi %s2610_s12, %s2931_s12  }
   0x5   : > { %s2635_s18 = sadd.s32 1, %s2580_s15   ;;  %s92_s19 = sadd.s32 1, %s2576_s14 }
   0x6   : > { %s89_s20 = ssub.s32 %s2580_s15, %s2635_s18  ;;  %p102_p0 = scmp.ne.s32.totalorder %s2576_s14, %s2572_s13 }
   0x7   : > { %p90_p1 = scmp.eq.s32.totalorder %s89_s20, 0  ;;  %p103_p2 = scmp.eq.s32.totalorder %s2631_s16, 1 }
   0x8   : > { %p108_p3 = scmp.ne.s32.totalorder %s2572_s13, %s2568_s12  ;;  %p109_p4 = scmp.eq.s32.totalorder %s1436_s17, 1 }
   0x9   : > { %s2646_s21 = scalar_select %p90_p1, %s2576_s14, %s92_s19  }
   0xa   : > { %p2648_p5 = por %p103_p2, %p102_p0  ;;  %p2652_p6 = por %p109_p4, %p108_p3 }
   0xb   : > { %p1437_p7 = scmp.ge.s32.totalorder %s2580_s15, 1  ;;  %p116_p8 = scmp.lt.s32.totalorder %s2580_s15, 3 }
   0xc   : > { %s2922_s22 = scalar_select %p2648_p5, 1, 0 }
   0xd   : > { %s2923_s23 = scalar_select %p2652_p6, 1, 0 }
   0xe   : > { %p2919_p9 = scmp.eq.s32.totalorder %s2631_s16, 0  ;;  %p2659_p10 = pnand %p1437_p7, %p116_p8 }
   0xf   : > { %s2582_s25 = smov [#allocation2]   ;;  %s2486_s30 = scalar_lea.hbm %s2916_s1, 18432 }
  0x10   : > { %s2924_s24 = scalar_select %p2659_p10, 1, 0 }
  0x11   : > { %s128_s26 = sshll.u32 %s2582_s25, 4  ;;  %p2316_p11 = pneg %p2659_p10  ;;  %s129_s26 = int_to_ptr.vmem [resolvable:$true] %s128_s26 }
  0x12   : > { %p2487_p13 = scmp.ne.s32.totalorder %s2916_s1, %s2486_s30  ;;  %p2493_p3 = scmp.lt.u32.totalorder %s2486_s30, %s2916_s1 }
  0x13   : > { %p2667_p12 = pnand %p2919_p9, %p2316_p11 }
  0x15   : > { %p2488_p0 = pneg %p2667_p12 }
  0x17   : > { %p2489_p1 = pnand %p2488_p0, %p2487_p13 }
  0x19   : > { %p2490_p2 = pneg %p2489_p1 }
  0x1b   : > { %p2495_p4 = pnand %p2493_p3, %p2490_p2 }
  0x1d   : > { %2498 = shalt.err (!%p2495_p4)
}
  0x1e   : > { %s2499_s8 = scalar_lea.vmem %s129_s26, 18432  ;;  %p2507_p9 = scmp.lt.s32.totalorder %s129_s26, %s129_s26 }
  0x1f   : > { %p2500_p7 = scmp.ne.s32.totalorder %s129_s26, %s2499_s8  ;;  %p2508_p6 = scmp.lt.s32.totalorder %s2499_s8, %s2499_s8 }
  0x21   : > { %p2502_p8 = pnand %p2500_p7, %p2488_p0  ;;  %p2509_p5 = por %p2508_p6, %p2507_p9 }
  0x23   : > { %p2503_p11 = pneg %p2502_p8 }
  0x25   : > { %p2510_p10 = pnand %p2509_p5, %p2503_p11 }
  0x27   : > { %2513 = shalt.err (!%p2510_p10)
}
  0x28   : > { %s2583_s9 = smov 128   ;;  %s2584_s10 = smov 8  }
  0x29   : > { %2319 = dma.hbm_to_vmem [thread:$0]  (!%p2667_p12), %s2916_s1, 18432, %s129_s26, [#allocation3], %s2583_s9, %s2583_s9, %s2584_s10  }
  0x2a   : > { %p2926_p13 = scmp.ne.s32.totalorder %s2924_s24, 0 }
  0x2b   : > { %p2927_p1 = scmp.eq.s32.totalorder (!%p2926_p13), %s2631_s16, 0 }
  0x2c   : > { %155 = sbr.rel (%p2926_p13) target bundleno = 545 (0x221), region = 32 }
  0x33   : > { %2559 = dma.done.wait (%p2927_p1), [#allocation3], 18432   ;;  %p2928_p0 = pmov %p2927_p1 }
  0x34   : > { %p179_p5 = scmp.lt.s32.totalorder %s2631_s16, 1  ;;  %vm576_vm0 = vcmask 1046528   ;;  %s2585_s24 = smov 124   ;;  %v210_v24 = vld [vmem:[#allocation2 + $0x80] sm:$0xff]  ;;  %v211_v29 = vld [vmem:[#allocation2 + $0x88] sm:$0xff]  ;;  %v212_v30 = vld [vmem:[#allocation2 + $0x90] sm:$0xff] }
  0x35   : > { %2561 = vsyncadd (%p2928_p0), [#allocation3], 4294948864  ;;  %v213_v31 = vld [vmem:[#allocation2 + $0x98] sm:$0xff]  ;;  %v679_v34 = vld [vmem:[#allocation2 + $0x200] sm:$0xff]  ;;  %v1973_v38 = vpack.c.bf16 %v211_v29, %v210_v24  ;;  %s2586_s26 = smov 120   ;;  %vm963_vm1 = vcmask 1045504  }
  0x36   : > { %s180_s19 = scalar_select %p179_p5, %s2631_s16, 1  ;;  %v680_v35 = vld [vmem:[#allocation2 + $0x208] sm:$0xff]  ;;  %v1977_v39 = vpack.c.bf16 %v213_v31, %v212_v30  ;;  %v214_v43 = vld [vmem:[#allocation2 + $0xa0] sm:$0xff]  ;;  %v681_v45 = vld [vmem:[#allocation2 + $0x210] sm:$0xff]  ;;  %vm250_vm2 = vcmask 1014784   ;;  %vm461_vm3 = vcmask 982016  }
  0x37   : > { %v2101_v42 = vpack.c.bf16 %v680_v35, %v679_v34  ;;  %v215_v44 = vld [vmem:[#allocation2 + $0xa8] sm:$0xff]  ;;  %1974 = vmatprep.subr.bf16.mxu1 %v1973_v38  ;;  %v682_v46 = vld [vmem:[#allocation2 + $0x218] sm:$0xff]  ;;  %v216_v51 = vld [vmem:[#allocation2 + $0xb0] sm:$0xff]  ;;  %s176_s29 = sand.u32 1, %s2572_s13   ;;  %s1450_s8 = sshll.u32 %s2631_s16, 9 }
  0x38   : > { %s2309_s20 = smul.u32 80, %s180_s19  ;;  %1976 = vmatpush3.bf16.msra.mxu1 %v1973_v38  ;;  %v1981_v49 = vpack.c.bf16 %v215_v44, %v214_v43  ;;  %v2105_v50 = vpack.c.bf16 %v682_v46, %v681_v45  ;;  %v217_v52 = vld [vmem:[#allocation2 + $0xb8] sm:$0xff]  ;;  %v683_v53 = vld [vmem:[#allocation2 + $0x220] sm:$0xff]  ;;  %v684_v54 = vld [vmem:[#allocation2 + $0x228] sm:$0xff]  ;;  %s1442_s30 = sshll.u32 %s176_s29, 5 }
  0x39   : > { %1978 = vmatprep.subr.bf16.mxu1 %v1977_v39  ;;  %2102 = vmatprep.subr.bf16.mxu0 %v2101_v42  ;;  %v1985_v55 = vpack.c.bf16 %v217_v52, %v216_v51  ;;  %v2109_v56 = vpack.c.bf16 %v684_v54, %v683_v53  ;;  %v218_v57 = vld [vmem:[#allocation2 + $0xc0] sm:$0xff]  ;;  %v219_v58 = vld [vmem:[#allocation2 + $0xc8] sm:$0xff]  ;;  %v685_v59 = vld [vmem:[#allocation2 + $0x230] sm:$0xff]  ;;  %s178_s6 = scalar_lea.vmem [#allocation5], %s1442_s30  ;;  %s2872_s11 = scalar_lea.hbm %s2918_s3, %s1450_s8 }
  0x3a   : > { %s183_s28 = scalar_lea.vmem %s2915_s0, %s2309_s20  ;;  %2104 = vmatpush3.bf16.msra.mxu0 %v2101_v42  ;;  %v686_v60 = vld [vmem:[#allocation2 + $0x238] sm:$0xff]  ;;  %v1989_v61 = vpack.c.bf16 %v219_v58, %v218_v57  ;;  %v220_v63 = vld [vmem:[#allocation2 + $0xd0] sm:$0xff]  ;;  %v194_v45 = vld [vmem:[#allocation2] sm:$0xff]  ;;  %s1362_s7 = sshll.u32 %s178_s6, 4  ;;  %s2867_s7 = int_to_ptr.vmem [resolvable:$true] %s1362_s7 }
  0x3b   : > { %v2698_v0 = vld [vmem:[%s183_s28] sm:$0xff]  ;;  %v2700_v1 = vld [vmem:[%s183_s28 + $0x8] sm:$0xff]  ;;  %v2702_v2 = vld [vmem:[%s183_s28 + $0x10] sm:$0xff]  ;;  %2106 = vmatprep.subr.bf16.mxu0 %v2105_v50  ;;  %v2113_v62 = vpack.c.bf16 %v686_v60, %v685_v59  ;;  %s2874_s16 = scalar_lea.sflag [#allocation4], %s176_s29  ;;  %s2514_s17 = scalar_lea.vmem %s2867_s7, 512 }
  0x3c   : > { %v2706_v3 = vpack.i.bf16 %v2700_v1, %v2698_v0  ;;  %v2708_v4 = vld [vmem:[%s183_s28 + $0x18] sm:$0xff]  ;;  %v577_v5 = vrot.slane %v2698_v0, 1  ;;  %v578_v6 = vrot.slane %v2702_v2, 1  ;;  %v696_v7 = vrot.slane %v2700_v1, 1  ;;  %v2713_v8 = vld [vmem:[%s183_s28 + $0x20] sm:$0xff]  ;;  %v2715_v9 = vld [vmem:[%s183_s28 + $0x28] sm:$0xff]  ;;  %1980 = vmatpush3.bf16.msra.mxu1 %v1977_v39  ;;  %p2515_p6 = scmp.ne.s32.totalorder %s2867_s7, %s2514_s17 }
  0x3d   : > { %v2719_v10 = vpack.i.bf16 %v2708_v4, %v2702_v2  ;;  %v697_v11 = vrot.slane %v2708_v4, 1  ;;  %v580_v12 = vrot.slane %v2713_v8, 1  ;;  %v699_v13 = vrot.slane %v2715_v9, 1  ;;  %v2724_v14 = vld [vmem:[%s183_s28 + $0x30] sm:$0xff]  ;;  %v2726_v15 = vld [vmem:[%s183_s28 + $0x38] sm:$0xff]  ;;  %1982 = vmatprep.subr.bf16.mxu1 %v1981_v49  ;;  %v691_v39 = vld [vmem:[#allocation2 + $0x260] sm:$0xff] }
  0x3e   : > { %2367 = vrot.lane.b32.xlu0 %v2706_v3, %s2585_s24  ;;  %v2731_v16 = vsel %vm576_vm0, %v577_v5, %v578_v6  ;;  %v582_v17 = vrot.slane %v2724_v14, 1  ;;  %v701_v18 = vrot.slane %v2726_v15, 1  ;;  %v2735_v19 = vld [vmem:[%s183_s28 + $0x40] sm:$0x3]  ;;  %v2737_v20 = vld [vmem:[%s183_s28 + $0x48] sm:$0x3]  ;;  %v2757_v36 = vpack.i.bf16 %v2715_v9, %v2713_v8  ;;  %2108 = vmatpush3.bf16.msra.mxu0 %v2105_v50 }
  0x3f   : > { %2377 = vrot.lane.b32.xlu1 %v2719_v10, %s2585_s24  ;;  %v698_v21 = vsel %vm576_vm0, %v696_v7, %v697_v11  ;;  %v2743_v22 = vsel %vm576_vm0, %v578_v6, %v580_v12  ;;  %v700_v23 = vsel %vm576_vm0, %v697_v11, %v699_v13  ;;  %v584_v32 = vrot.slane %v2735_v19, 1  ;;  %2110 = vmatprep.subr.bf16.mxu0 %v2109_v56  ;;  %v221_v5 = vld [vmem:[#allocation2 + $0xd8] sm:$0xff]  ;;  %v687_v6 = vld [vmem:[#allocation2 + $0x240] sm:$0xff]  ;;  %v688_v7 = vld [vmem:[#allocation2 + $0x248] sm:$0xff]  ;;  %p2929_p9 = scmp.ne.s32.totalorder %s2922_s22, 0  ;;  %s2587_s19 = smov [#allocation5]  }
  0x40   : > { %v2371_v25 = vpack.i.bf16 %v698_v21, %v2731_v16  ;;  %v2381_v26 = vpack.i.bf16 %v700_v23, %v2743_v22  ;;  %v2749_v27 = vsel %vm576_vm0, %v580_v12, %v582_v17  ;;  %v702_v28 = vsel %vm576_vm0, %v699_v13, %v701_v18  ;;  %1984 = vmatpush3.bf16.msra.mxu1 %v1981_v49  ;;  %v690_v29 = vld [vmem:[#allocation2 + $0x258] sm:$0xff]  ;;  %v195_v46 = vld [vmem:[#allocation2 + $0x8] sm:$0xff]  ;;  %v818_v52 = vld [vmem:[#allocation2 + $0x280] sm:$0xff]  ;;  %s2518_s20 = sshll.u32 %s2587_s19, 4  ;;  %s2519_s20 = int_to_ptr.vmem [resolvable:$false] %s2518_s20 }
  0x41   : > { %v703_v33 = vrot.slane %v2737_v20, 1  ;;  %v2396_v37 = vpack.i.bf16 %v702_v28, %v2749_v27  ;;  %v2762_v40 = vsel %vm576_vm0, %v582_v17, %v584_v32  ;;  %v2769_v47 = vpack.i.bf16 %v2726_v15, %v2724_v14  ;;  %1986 = vmatprep.subr.bf16.mxu1 %v1985_v55  ;;  %v689_v28 = vld [vmem:[#allocation2 + $0x250] sm:$0xff]  ;;  %v225_v38 = vld [vmem:[#allocation2 + $0xf8] sm:$0xff]  ;;  %v819_v53 = vld [vmem:[#allocation2 + $0x288] sm:$0xff]  ;;  %p2516_p10 = pnand %p2515_p6, %p2929_p9  ;;  %s2520_s25 = scalar_lea.vmem %s2519_s20, 1024 }
  0x42   : > { %2372 = vrot.lane.b32.xlu0 %v2371_v25, %s2585_s24  ;;  %2112 = vmatpush3.bf16.msra.mxu0 %v2109_v56  ;;  %v964_v11 = vrot.slane %v2698_v0, 2  ;;  %v965_v12 = vrot.slane %v2702_v2, 2  ;;  %v1082_v13 = vrot.slane %v2700_v1, 2  ;;  %v1083_v17 = vrot.slane %v2708_v4, 2  ;;  %v694_v49 = vld [vmem:[#allocation2 + $0x278] sm:$0xff]  ;;  %v196_v57 = vld [vmem:[#allocation2 + $0x10] sm:$0xff]  ;;  %p2521_p2 = scmp.lt.s32.totalorder %s2867_s7, %s2519_s20  ;;  %p2522_p3 = scmp.lt.s32.totalorder %s2520_s25, %s2514_s17 }
  0x43   : > { %2382 = vrot.lane.b32.xlu1 %v2381_v26, %s2585_s24  ;;  %v704_v41 = vsel %vm576_vm0, %v701_v18, %v703_v33  ;;  %v967_v18 = vrot.slane %v2713_v8, 2  ;;  %v1085_v21 = vrot.slane %v2715_v9, 2  ;;  %v1993_v23 = vpack.c.bf16 %v221_v5, %v220_v63  ;;  %2114 = vmatprep.subr.bf16.mxu0 %v2113_v62  ;;  %v197_v58 = vld [vmem:[#allocation2 + $0x18] sm:$0xff]  ;;  %p2517_p12 = pneg %p2516_p10 }
  0x44   : > { %v2401_v48 = vpack.i.bf16 %v704_v41, %v2762_v40  ;;  %1988 = vmatpush3.bf16.msra.mxu1 %v1985_v55  ;;  %v2117_v24 = vpack.c.bf16 %v688_v7, %v687_v6  ;;  %v2789_v1 = vsel %vm963_vm1, %v964_v11, %v965_v12  ;;  %v1084_v4 = vsel %vm963_vm1, %v1082_v13, %v1083_v17  ;;  %v198_v7 = vld [vmem:[#allocation2 + $0x20] sm:$0xff]  ;;  %v199_v13 = vld [vmem:[#allocation2 + $0x28] sm:$0xff]  ;;  %p2523_p4 = por %p2522_p3, %p2521_p2 }
  0x45   : > { %1990 = vmatprep.subr.bf16.mxu1 %v1989_v61  ;;  %v969_v9 = vrot.slane %v2724_v14, 2  ;;  %v2796_v30 = vsel %vm963_vm1, %v965_v12, %v967_v18  ;;  %v1086_v31 = vsel %vm963_vm1, %v1083_v17, %v1085_v21  ;;  %v1087_v32 = vrot.slane %v2726_v15, 2  ;;  %v820_v17 = vld [vmem:[#allocation2 + $0x290] sm:$0xff] }
  0x46   : > { %2387 = vrot.lane.b32.xlu0 %v2757_v36, %s2585_s24  ;;  %2116 = vmatpush3.bf16.msra.mxu0 %v2113_v62  ;;  %v971_v33 = vrot.slane %v2735_v19, 2  ;;  %v1089_v34 = vrot.slane %v2737_v20, 2  ;;  %v2121_v35 = vpack.c.bf16 %v690_v29, %v689_v28  ;;  %v2446_v41 = vpack.i.bf16 %v1084_v4, %v2789_v1  ;;  %p2524_p7 = pnand %p2523_p4, %p2517_p12 }
  0x47   : > { %2397 = vrot.lane.b32.xlu1 %v2396_v37, %s2585_s24  ;;  %2118 = vmatprep.subr.bf16.mxu0 %v2117_v24  ;;  %v2451_v15 = vpack.i.bf16 %v1086_v31, %v2796_v30  ;;  %v2809_v19 = vsel %vm963_vm1, %v967_v18, %v969_v9  ;;  %v1088_v20 = vsel %vm963_vm1, %v1085_v21, %v1087_v32  ;;  %v821_v18 = vld [vmem:[#allocation2 + $0x298] sm:$0xff] }
  0x48   : > { %1992 = vmatpush3.bf16.msra.mxu1 %v1989_v61  ;;  %v2813_v43 = vsel %vm963_vm1, %v969_v9, %v971_v33  ;;  %v2005_v51 = vpack.c.bf16 %v195_v46, %v194_v45  ;;  %v2133_v55 = vpack.c.bf16 %v819_v53, %v818_v52  ;;  %v2009_v6 = vpack.c.bf16 %v197_v58, %v196_v57  ;;  %v200_v9 = vld [vmem:[#allocation2 + $0x30] sm:$0xff]  ;;  %v823_v33 = vld [vmem:[#allocation2 + $0x2a8] sm:$0xff]  ;;  %v825_v45 = vld [vmem:[#allocation2 + $0x2b8] sm:$0xff] }
  0x49   : > { %1994 = vmatprep.subr.bf16.mxu1 %v1993_v23  ;;  %v2013_v29 = vpack.c.bf16 %v199_v13, %v198_v7  ;;  %v2137_v4 = vpack.c.bf16 %v821_v18, %v820_v17  ;;  %v205_v57 = vld [vmem:[#allocation2 + $0x58] sm:$0xff]  ;;  %v826_v58 = vld [vmem:[#allocation2 + $0x2c0] sm:$0xff]  ;;  %v828_v13 = vld [vmem:[#allocation2 + $0x2d0] sm:$0xff] }
  0x4a   : > { %2392 = vrot.lane.b32.xlu0 %v2769_v47, %s2585_s24  ;;  %2120 = vmatpush3.bf16.msra.mxu0 %v2117_v24  ;;  %v206_v7 = vld [vmem:[#allocation2 + $0x60] sm:$0xff]  ;;  %v829_v17 = vld [vmem:[#allocation2 + $0x2d8] sm:$0xff] }
  0x4b   : > { %2402 = vrot.lane.b32.xlu1 %v2401_v48, %s2585_s24  ;;  %2122 = vmatprep.subr.bf16.mxu0 %v2121_v35 }
  0x4c   : > { %1996 = vmatpush3.bf16.msra.mxu1 %v1993_v23 }
  0x4e   : > { %2407 = vrot.lane.b32.xlu0 %v2371_v25, %s2586_s26  ;;  %v222_v25 = vld [vmem:[#allocation2 + $0xe0] sm:$0xff]  ;;  %2124 = vmatpush3.bf16.msra.mxu0 %v2121_v35 }
  0x4f   : > { %2412 = vrot.lane.b32.xlu1 %v2381_v26, %s2586_s26  ;;  %v223_v26 = vld [vmem:[#allocation2 + $0xe8] sm:$0xff] }
  0x52   : > { %2417 = vrot.lane.b32.xlu0 %v2396_v37, %s2586_s26  ;;  %v224_v37 = vld [vmem:[#allocation2 + $0xf0] sm:$0xff] }
  0x53   : > { %2422 = vrot.lane.b32.xlu1 %v2401_v48, %s2586_s26  ;;  %v2001_v42 = vpack.c.bf16 %v225_v38, %v224_v37  ;;  %v693_v48 = vld [vmem:[#allocation2 + $0x270] sm:$0xff] }
  0x54   : > { %v2129_v54 = vpack.c.bf16 %v694_v49, %v693_v48 }
  0x56   : > { %2427 = vrot.lane.b32.xlu0 %v2706_v3, %s2586_s26  ;;  %v1997_v3 = vpack.c.bf16 %v223_v26, %v222_v25 }
  0x57   : > { %2432 = vrot.lane.b32.xlu1 %v2719_v10, %s2586_s26  ;;  %v692_v10 = vld [vmem:[#allocation2 + $0x268] sm:$0xff] }
  0x58   : > { %1998 = vmatprep.subr.bf16.mxu1 %v1997_v3  ;;  %v2125_v44 = vpack.c.bf16 %v692_v10, %v691_v39 }
  0x59   : > { %2000 = vmatpush3.bf16.msra.mxu1 %v1997_v3  ;;  %v822_v3 = vld [vmem:[#allocation2 + $0x2a0] sm:$0xff] }
  0x5a   : > { %2437 = vrot.lane.b32.xlu0 %v2757_v36, %s2586_s26  ;;  %v1090_v36 = vsel %vm963_vm1, %v1087_v32, %v1089_v34  ;;  %2002 = vmatprep.subr.bf16.mxu1 %v2001_v42  ;;  %v201_v32 = vld [vmem:[#allocation2 + $0x38] sm:$0xff] }
  0x5b   : > { %2442 = vrot.lane.b32.xlu1 %v2769_v47, %s2586_s26  ;;  %v2456_v47 = vpack.i.bf16 %v1088_v20, %v2809_v19  ;;  %v2461_v50 = vpack.i.bf16 %v1090_v36, %v2813_v43  ;;  %2126 = vmatprep.subr.bf16.mxu0 %v2125_v44  ;;  %v202_v20 = vld [vmem:[#allocation2 + $0x40] sm:$0xff]  ;;  %v203_v36 = vld [vmem:[#allocation2 + $0x48] sm:$0xff] }
  0x5c   : > { %2128 = vmatpush3.bf16.msra.mxu0 %v2125_v44  ;;  %v824_v44 = vld [vmem:[#allocation2 + $0x2b0] sm:$0xff]  ;;  %v2021_v53 = vpack.c.bf16 %v203_v36, %v202_v20  ;;  %v433_v36 = vld [vmem:[#allocation2 + $0x120] sm:$0xff] }
  0x5d   : > { %2004 = vmatpush3.bf16.msra.mxu1 %v2001_v42  ;;  %2130 = vmatprep.subr.bf16.mxu0 %v2129_v54 }
  0x5e   : > { %2447 = vrot.lane.b32.xlu0 %v2446_v41, %s2585_s24  ;;  %2006 = vmatprep.subr.bf16.mxu1 %v2005_v51 }
  0x5f   : > { %2452 = vrot.lane.b32.xlu1 %v2451_v15, %s2585_s24 }
  0x60   : > { %2132 = vmatpush3.bf16.msra.mxu0 %v2129_v54  ;;  %v2145_v54 = vpack.c.bf16 %v825_v45, %v824_v44  ;;  %v434_v44 = vld [vmem:[#allocation2 + $0x128] sm:$0xff]  ;;  %v949_v45 = vld [vmem:[#allocation2 + $0x310] sm:$0xff] }
  0x61   : > { %2134 = vmatprep.subr.bf16.mxu0 %v2133_v55 }
  0x62   : > { %2457 = vrot.lane.b32.xlu0 %v2456_v47, %s2585_s24 }
  0x63   : > { %2462 = vrot.lane.b32.xlu1 %v2461_v50, %s2585_s24 }
  0x66   : > { %2467 = vrot.lane.b32.xlu0 %v2446_v41, %s2586_s26  ;;  %v2017_v41 = vpack.c.bf16 %v201_v32, %v200_v9  ;;  %v832_v9 = vld [vmem:[#allocation2 + $0x2f0] sm:$0xff] }
  0x67   : > { %2472 = vrot.lane.b32.xlu1 %v2456_v47, %s2586_s26 }
  0x6a   : > { %2477 = vrot.lane.b32.xlu0 %v2451_v15, %s2586_s26  ;;  %v2141_v15 = vpack.c.bf16 %v823_v33, %v822_v3 }
  0x6b   : > { %2482 = vrot.lane.b32.xlu1 %v2461_v50, %s2586_s26 }
  0xb0   : > { %v2368_v56 = vpop.permute.xlu0 %2367 }
  0xb1   : > { %v2370_v59 = vunpack.i.h.bf16 %v2368_v56  ;;  %v2369_v60 = vunpack.i.l.bf16 %v2368_v56  ;;  %v2378_v61 = vpop.permute.xlu1 %2377 }
  0xb2   : > { %v2380_v62 = vunpack.i.h.bf16 %v2378_v61  ;;  %v2379_v63 = vunpack.i.l.bf16 %v2378_v61 }
  0xb3   : > { %v251_v5 = vsel %vm250_vm2, %v2369_v60, %v2370_v59  ;;  %v827_v59 = vld [vmem:[#allocation2 + $0x2c8] sm:$0xff] }
  0xb4   : > { %1663 = vmatprep.mubr.f32.mxu1 %v251_v5  ;;  %v2373_v11 = vpop.permute.xlu0 %2372  ;;  %v252_v12 = vsel %vm250_vm2, %v2379_v63, %v2380_v62 }
  0xb5   : > { %v2375_v21 = vunpack.i.h.bf16 %v2373_v11  ;;  %v2374_v23 = vunpack.i.l.bf16 %v2373_v11  ;;  %v2383_v24 = vpop.permute.xlu1 %2382  ;;  %1664 = vmatmul.mubr.f32.vlgmr.msra.gmra.mrb[0].mxu1 %v252_v12  ;;  %v207_v12 = vld [vmem:[#allocation2 + $0x68] sm:$0xff] }
  0xb6   : > { %v2385_v25 = vunpack.i.h.bf16 %v2383_v24  ;;  %v2384_v26 = vunpack.i.l.bf16 %v2383_v24  ;;  %2008 = vmatpush3.bf16.msra.mxu1 %v2005_v51  ;;  %v2029_v18 = vpack.c.bf16 %v207_v12, %v206_v7  ;;  %v830_v24 = vld [vmem:[#allocation2 + $0x2e0] sm:$0xff]  ;;  %v438_v7 = vld [vmem:[#allocation2 + $0x148] sm:$0xff]  ;;  %v954_v12 = vld [vmem:[#allocation2 + $0x338] sm:$0xff] }
  0xb7   : > { %2010 = vmatprep.subr.bf16.mxu1 %v2009_v6  ;;  %v721_v28 = vsel %vm250_vm2, %v2374_v23, %v2375_v21  ;;  %v208_v21 = vld [vmem:[#allocation2 + $0x70] sm:$0xff]  ;;  %v209_v23 = vld [vmem:[#allocation2 + $0x78] sm:$0xff] }
  0xb8   : > { %1815 = vmatprep.mubr.f32.mxu0 %v721_v28  ;;  %v722_v31 = vsel %vm250_vm2, %v2384_v26, %v2385_v25  ;;  %v2388_v34 = vpop.permute.xlu0 %2387  ;;  %v831_v25 = vld [vmem:[#allocation2 + $0x2e8] sm:$0xff]  ;;  %v2033_v26 = vpack.c.bf16 %v209_v23, %v208_v21 }
  0xb9   : > { %1816 = vmatmul.mubr.f32.vlgmr.msra.gmra.mrb[0].mxu0 %v722_v31  ;;  %v2390_v35 = vunpack.i.h.bf16 %v2388_v34  ;;  %v2389_v37 = vunpack.i.l.bf16 %v2388_v34  ;;  %v2398_v38 = vpop.permute.xlu1 %2397  ;;  %v2157_v28 = vpack.c.bf16 %v831_v25, %v830_v24  ;;  %v833_v31 = vld [vmem:[#allocation2 + $0x2f8] sm:$0xff]  ;;  %v441_v24 = vld [vmem:[#allocation2 + $0x160] sm:$0xff]  ;;  %v442_v25 = vld [vmem:[#allocation2 + $0x168] sm:$0xff] }
  0xba   : > { %2012 = vmatpush3.bf16.msra.mxu1 %v2009_v6  ;;  %2136 = vmatpush3.bf16.msra.mxu0 %v2133_v55  ;;  %v2400_v39 = vunpack.i.h.bf16 %v2398_v38  ;;  %v2399_v10 = vunpack.i.l.bf16 %v2398_v38  ;;  %v204_v55 = vld [vmem:[#allocation2 + $0x50] sm:$0xff]  ;;  %v2149_v6 = vpack.c.bf16 %v827_v59, %v826_v58  ;;  %v2161_v33 = vpack.c.bf16 %v833_v31, %v832_v9  ;;  %v947_v38 = vld [vmem:[#allocation2 + $0x300] sm:$0xff]  ;;  %v436_v58 = vld [vmem:[#allocation2 + $0x138] sm:$0xff] }
  0xbb   : > { %2014 = vmatprep.subr.bf16.mxu1 %v2013_v29  ;;  %2138 = vmatprep.subr.bf16.mxu0 %v2137_v4  ;;  %v253_v42 = vsel %vm250_vm2, %v2389_v37, %v2390_v35  ;;  %v2025_v5 = vpack.c.bf16 %v205_v57, %v204_v55  ;;  %v431_v35 = vld [vmem:[#allocation2 + $0x110] sm:$0xff]  ;;  %v432_v37 = vld [vmem:[#allocation2 + $0x118] sm:$0xff]  ;;  %v2045_v55 = vpack.c.bf16 %v434_v44, %v433_v36  ;;  %v951_v59 = vld [vmem:[#allocation2 + $0x320] sm:$0xff] }
  0xbc   : > { %v2393_v46 = vpop.permute.xlu0 %2392  ;;  %1666 = vmatprep.mubr.f32.mxu1 %v253_v42  ;;  %v723_v48 = vsel %vm250_vm2, %v2399_v10, %v2400_v39  ;;  %v948_v39 = vld [vmem:[#allocation2 + $0x308] sm:$0xff]  ;;  %v2041_v20 = vpack.c.bf16 %v432_v37, %v431_v35  ;;  %v435_v57 = vld [vmem:[#allocation2 + $0x130] sm:$0xff]  ;;  %v444_v31 = vld [vmem:[#allocation2 + $0x178] sm:$0xff] }
  0xbd   : > { %v2395_v49 = vunpack.i.h.bf16 %v2393_v46  ;;  %v2394_v47 = vunpack.i.l.bf16 %v2393_v46  ;;  %v2403_v50 = vpop.permute.xlu1 %2402  ;;  %1818 = vmatprep.mubr.f32.mxu0 %v723_v48  ;;  %v2165_v42 = vpack.c.bf16 %v948_v39, %v947_v38  ;;  %v950_v46 = vld [vmem:[#allocation2 + $0x318] sm:$0xff]  ;;  %v443_v9 = vld [vmem:[#allocation2 + $0x170] sm:$0xff]  ;;  %v559_v35 = vld [vmem:[#allocation2 + $0x180] sm:$0xff] }
  0xbe   : > { %2016 = vmatpush3.bf16.msra.mxu1 %v2013_v29  ;;  %2140 = vmatpush3.bf16.msra.mxu0 %v2137_v4  ;;  %v2405_v51 = vunpack.i.h.bf16 %v2403_v50  ;;  %v2404_v52 = vunpack.i.l.bf16 %v2403_v50  ;;  %v429_v29 = vld [vmem:[#allocation2 + $0x100] sm:$0xff]  ;;  %v430_v4 = vld [vmem:[#allocation2 + $0x108] sm:$0xff]  ;;  %v961_v38 = vld [vmem:[#allocation2 + $0x370] sm:$0xff] }
  0xbf   : > { %2018 = vmatprep.subr.bf16.mxu1 %v2017_v41  ;;  %2142 = vmatprep.subr.bf16.mxu0 %v2141_v15  ;;  %v254_v56 = vsel %vm250_vm2, %v2394_v47, %v2395_v49  ;;  %v2037_v3 = vpack.c.bf16 %v430_v4, %v429_v29  ;;  %v2061_v29 = vpack.c.bf16 %v442_v25, %v441_v24  ;;  %v560_v37 = vld [vmem:[#allocation2 + $0x188] sm:$0xff]  ;;  %v962_v39 = vld [vmem:[#allocation2 + $0x378] sm:$0xff]  ;;  %v561_v36 = vld [vmem:[#allocation2 + $0x190] sm:$0xff] }
  0xc0   : > { %1667 = vmatmul.mubr.f32.gmra.mrb[2].mxu1 %v254_v56  ;;  %v2408_v60 = vpop.permute.xlu0 %2407  ;;  %v724_v61 = vsel %vm250_vm2, %v2404_v52, %v2405_v51  ;;  %v2169_v56 = vpack.c.bf16 %v950_v46, %v949_v45  ;;  %v562_v45 = vld [vmem:[#allocation2 + $0x198] sm:$0xff]  ;;  %v1066_v46 = vld [vmem:[#allocation2 + $0x380] sm:$0xff]  ;;  %v569_v24 = vld [vmem:[#allocation2 + $0x1d0] sm:$0xff] }
  0xc1   : > { %v2410_v62 = vunpack.i.h.bf16 %v2408_v60  ;;  %v2409_v63 = vunpack.i.l.bf16 %v2408_v60  ;;  %1701 = vmatprep.mubr.f32.mxu1 %v2698_v0  ;;  %1819 = vmatmul.mubr.f32.gmra.mrb[2].mxu0 %v724_v61  ;;  %v2153_v0 = vpack.c.bf16 %v829_v17, %v828_v13  ;;  %v2413_v34 = vpop.permute.xlu1 %2412  ;;  %v952_v60 = vld [vmem:[#allocation2 + $0x328] sm:$0xff]  ;;  %v439_v13 = vld [vmem:[#allocation2 + $0x150] sm:$0xff]  ;;  %v440_v17 = vld [vmem:[#allocation2 + $0x158] sm:$0xff] }
  0xc2   : > { %2020 = vmatpush3.bf16.msra.mxu1 %v2017_v41  ;;  %2144 = vmatpush3.bf16.msra.mxu0 %v2141_v15  ;;  %v2415_v10 = vunpack.i.h.bf16 %v2413_v34  ;;  %v2414_v41 = vunpack.i.l.bf16 %v2413_v34  ;;  %v2057_v21 = vpack.c.bf16 %v440_v17, %v439_v13  ;;  %v567_v13 = vld [vmem:[#allocation2 + $0x1c0] sm:$0xff]  ;;  %v568_v17 = vld [vmem:[#allocation2 + $0x1c8] sm:$0xff]  ;;  %v570_v25 = vld [vmem:[#allocation2 + $0x1d8] sm:$0xff] }
  0xc3   : > { %2022 = vmatprep.subr.bf16.mxu1 %v2021_v53  ;;  %2146 = vmatprep.subr.bf16.mxu0 %v2145_v54  ;;  %v850_v11 = vsel %vm461_vm3, %v2409_v63, %v2410_v62  ;;  %v2049_v63 = vpack.c.bf16 %v436_v58, %v435_v57  ;;  %v1068_v57 = vld [vmem:[#allocation2 + $0x390] sm:$0xff]  ;;  %v1069_v58 = vld [vmem:[#allocation2 + $0x398] sm:$0xff] }
  0xc4   : > { %1853 = vmatprep.mubr.f32.mxu0 %v850_v11  ;;  %v2418_v32 = vpop.permute.xlu0 %2417  ;;  %v851_v52 = vsel %vm461_vm3, %v2414_v41, %v2415_v10  ;;  %v953_v11 = vld [vmem:[#allocation2 + $0x330] sm:$0xff] }
  0xc5   : > { %v2420_v48 = vunpack.i.h.bf16 %v2418_v32  ;;  %v2419_v49 = vunpack.i.l.bf16 %v2418_v32  ;;  %v2423_v47 = vpop.permute.xlu1 %2422  ;;  %v959_v32 = vld [vmem:[#allocation2 + $0x360] sm:$0xff] }
  0xc6   : > { %2024 = vmatpush3.bf16.msra.mxu1 %v2021_v53  ;;  %2148 = vmatpush3.bf16.msra.mxu0 %v2145_v54  ;;  %v2425_v53 = vunpack.i.h.bf16 %v2423_v47  ;;  %v2424_v54 = vunpack.i.l.bf16 %v2423_v47 }
  0xc7   : > { %2026 = vmatprep.subr.bf16.mxu1 %v2025_v5  ;;  %2150 = vmatprep.subr.bf16.mxu0 %v2149_v6  ;;  %v852_v61 = vsel %vm461_vm3, %v2419_v49, %v2420_v48  ;;  %v1067_v48 = vld [vmem:[#allocation2 + $0x388] sm:$0xff] }
  0xc8   : > { %v2428_v15 = vpop.permute.xlu0 %2427  ;;  %v853_v62 = vsel %vm461_vm3, %v2424_v54, %v2425_v53  ;;  %v2073_v53 = vpack.c.bf16 %v562_v45, %v561_v36  ;;  %v2197_v54 = vpack.c.bf16 %v1067_v48, %v1066_v46  ;;  %v1206_v45 = vld [vmem:[#allocation2 + $0x410] sm:$0xff]  ;;  %v1207_v46 = vld [vmem:[#allocation2 + $0x418] sm:$0xff] }
  0xc9   : > { %v2430_v50 = vunpack.i.h.bf16 %v2428_v15  ;;  %v2429_v51 = vunpack.i.l.bf16 %v2428_v15  ;;  %v2433_v34 = vpop.permute.xlu1 %2432 }
  0xca   : > { %2028 = vmatpush3.bf16.msra.mxu1 %v2025_v5  ;;  %2152 = vmatpush3.bf16.msra.mxu0 %v2149_v6  ;;  %v2173_v5 = vpack.c.bf16 %v952_v60, %v951_v59  ;;  %v437_v6 = vld [vmem:[#allocation2 + $0x140] sm:$0xff]  ;;  %v2435_v10 = vunpack.i.h.bf16 %v2433_v34  ;;  %v2434_v41 = vunpack.i.l.bf16 %v2433_v34  ;;  %v1079_v34 = vld [vmem:[#allocation2 + $0x3e8] sm:$0xff] }
  0xcb   : > { %2030 = vmatprep.subr.bf16.mxu1 %v2029_v18  ;;  %2154 = vmatprep.subr.bf16.mxu0 %v2153_v0 }
  0xcc   : > { %v2438_v15 = vpop.permute.xlu0 %2437 }
  0xcd   : > { %v2443_v44 = vpop.permute.xlu1 %2442  ;;  %v2440_v49 = vunpack.i.h.bf16 %v2438_v15  ;;  %v2439_v47 = vunpack.i.l.bf16 %v2438_v15  ;;  %v1205_v15 = vld [vmem:[#allocation2 + $0x408] sm:$0xff] }
  0xce   : > { %2032 = vmatpush3.bf16.msra.mxu1 %v2029_v18  ;;  %2156 = vmatpush3.bf16.msra.mxu0 %v2153_v0  ;;  %v955_v18 = vld [vmem:[#allocation2 + $0x340] sm:$0xff]  ;;  %v956_v0 = vld [vmem:[#allocation2 + $0x348] sm:$0xff] }
  0xcf   : > { %2034 = vmatprep.subr.bf16.mxu1 %v2033_v26  ;;  %2158 = vmatprep.subr.bf16.mxu0 %v2157_v28  ;;  %v2181_v23 = vpack.c.bf16 %v956_v0, %v955_v18  ;;  %v464_v59 = vsel %vm461_vm3, %v2439_v47, %v2440_v49  ;;  %v1072_v18 = vld [vmem:[#allocation2 + $0x3b0] sm:$0xff]  ;;  %v1073_v0 = vld [vmem:[#allocation2 + $0x3b8] sm:$0xff] }
  0xd2   : > { %2036 = vmatpush3.bf16.msra.mxu1 %v2033_v26  ;;  %2160 = vmatpush3.bf16.msra.mxu0 %v2157_v28  ;;  %v957_v26 = vld [vmem:[#allocation2 + $0x350] sm:$0xff]  ;;  %v958_v28 = vld [vmem:[#allocation2 + $0x358] sm:$0xff] }
  0xd3   : > { %2038 = vmatprep.subr.bf16.mxu1 %v2037_v3  ;;  %2162 = vmatprep.subr.bf16.mxu0 %v2161_v33  ;;  %v2185_v4 = vpack.c.bf16 %v958_v28, %v957_v26  ;;  %v1074_v26 = vld [vmem:[#allocation2 + $0x3c0] sm:$0xff]  ;;  %v1075_v28 = vld [vmem:[#allocation2 + $0x3c8] sm:$0xff] }
  0xd5   : > { %1702 = vmatmul.mubr.f32.vlgmr.msra.gmra.mrb[0].mxu1 %v2702_v2  ;;  %v462_v2 = vsel %vm461_vm3, %v2429_v51, %v2430_v50  ;;  %v463_v50 = vsel %vm461_vm3, %v2434_v41, %v2435_v10  ;;  %v2445_v51 = vunpack.i.h.bf16 %v2443_v44  ;;  %v1081_v10 = vld [vmem:[#allocation2 + $0x3f8] sm:$0xff]  ;;  %v1204_v41 = vld [vmem:[#allocation2 + $0x400] sm:$0xff] }
  0xd6   : > { %2040 = vmatpush3.bf16.msra.mxu1 %v2037_v3  ;;  %2164 = vmatpush3.bf16.msra.mxu0 %v2161_v33  ;;  %v2065_v3 = vpack.c.bf16 %v444_v31, %v443_v9  ;;  %v1077_v9 = vld [vmem:[#allocation2 + $0x3d8] sm:$0xff] }
  0xd7   : > { %2042 = vmatprep.subr.bf16.mxu1 %v2041_v20  ;;  %2166 = vmatprep.subr.bf16.mxu0 %v2165_v42 }
  0xd8   : > { %1704 = vmatprep.mubr.f32.mxu1 %v2713_v8  ;;  %v2053_v8 = vpack.c.bf16 %v438_v7, %v437_v6  ;;  %v1070_v6 = vld [vmem:[#allocation2 + $0x3a0] sm:$0xff]  ;;  %v1071_v7 = vld [vmem:[#allocation2 + $0x3a8] sm:$0xff] }
  0xd9   : > { %1854 = vmatmul.mubr.f32.vlgmr.msra.gmra.mrb[0].mxu0 %v851_v52  ;;  %1705 = vmatmul.mubr.f32.gmra.mrb[2].mxu1 %v2724_v14  ;;  %v2177_v14 = vpack.c.bf16 %v954_v12, %v953_v11  ;;  %v2444_v52 = vunpack.i.l.bf16 %v2443_v44 }
  0xda   : > { %2044 = vmatpush3.bf16.msra.mxu1 %v2041_v20  ;;  %2168 = vmatpush3.bf16.msra.mxu0 %v2165_v42  ;;  %v2069_v20 = vpack.c.bf16 %v560_v37, %v559_v35  ;;  %v2193_v42 = vpack.c.bf16 %v962_v39, %v961_v38  ;;  %v2453_v35 = vpop.permute.xlu1 %2452  ;;  %v1080_v39 = vld [vmem:[#allocation2 + $0x3f0] sm:$0xff] }
  0xdb   : > { %2046 = vmatprep.subr.bf16.mxu1 %v2045_v55  ;;  %2170 = vmatprep.subr.bf16.mxu0 %v2169_v56  ;;  %v465_v60 = vsel %vm461_vm3, %v2444_v52, %v2445_v51  ;;  %v2455_v48 = vunpack.i.h.bf16 %v2453_v35  ;;  %v2454_v49 = vunpack.i.l.bf16 %v2453_v35  ;;  %v2233_v51 = vpack.c.bf16 %v1207_v46, %v1206_v45 }
  0xdc   : > { %1739 = vmatprep.mubr.f32.mxu1 %v462_v2  ;;  %1856 = vmatprep.mubr.f32.mxu0 %v852_v61  ;;  %v2448_v2 = vpop.permute.xlu0 %2447 }
  0xdd   : > { %1857 = vmatmul.mubr.f32.gmra.mrb[2].mxu0 %v853_v62  ;;  %v2201_v62 = vpack.c.bf16 %v1069_v58, %v1068_v57  ;;  %v2450_v11 = vunpack.i.h.bf16 %v2448_v2  ;;  %v2449_v12 = vunpack.i.l.bf16 %v2448_v2 }
  0xde   : > { %2048 = vmatpush3.bf16.msra.mxu1 %v2045_v55  ;;  %2172 = vmatpush3.bf16.msra.mxu0 %v2169_v56  ;;  %v563_v55 = vld [vmem:[#allocation2 + $0x1a0] sm:$0xff]  ;;  %v564_v56 = vld [vmem:[#allocation2 + $0x1a8] sm:$0xff]  ;;  %v2463_v36 = vpop.permute.xlu1 %2462 }
  0xdf   : > { %2050 = vmatprep.subr.bf16.mxu1 %v2049_v63  ;;  %2174 = vmatprep.subr.bf16.mxu0 %v2173_v5  ;;  %v2077_v61 = vpack.c.bf16 %v564_v56, %v563_v55  ;;  %v2465_v57 = vunpack.i.h.bf16 %v2463_v36  ;;  %v2464_v58 = vunpack.i.l.bf16 %v2463_v36 }
  0xe0   : > { %1891 = vmatprep.mubr.f32.mxu0 %v2789_v1  ;;  %v960_v1 = vld [vmem:[#allocation2 + $0x368] sm:$0xff]  ;;  %v2458_v44 = vpop.permute.xlu0 %2457 }
  0xe1   : > { %v2189_v33 = vpack.c.bf16 %v960_v1, %v959_v32  ;;  %v573_v1 = vld [vmem:[#allocation2 + $0x1f0] sm:$0xff]  ;;  %v2460_v47 = vunpack.i.h.bf16 %v2458_v44 }
  0xe2   : > { %2052 = vmatpush3.bf16.msra.mxu1 %v2049_v63  ;;  %2176 = vmatpush3.bf16.msra.mxu0 %v2173_v5  ;;  %v565_v63 = vld [vmem:[#allocation2 + $0x1b0] sm:$0xff]  ;;  %v566_v5 = vld [vmem:[#allocation2 + $0x1b8] sm:$0xff]  ;;  %v2473_v52 = vpop.permute.xlu1 %2472 }
  0xe3   : > { %2054 = vmatprep.subr.bf16.mxu1 %v2053_v8  ;;  %2178 = vmatprep.subr.bf16.mxu0 %v2177_v14  ;;  %v2475_v55 = vunpack.i.h.bf16 %v2473_v52  ;;  %v2474_v56 = vunpack.i.l.bf16 %v2473_v52 }
  0xe6   : > { %2056 = vmatpush3.bf16.msra.mxu1 %v2053_v8  ;;  %2180 = vmatpush3.bf16.msra.mxu0 %v2177_v14  ;;  %v2081_v8 = vpack.c.bf16 %v566_v5, %v565_v63  ;;  %v2205_v14 = vpack.c.bf16 %v1071_v7, %v1070_v6  ;;  %v1238_v6 = vsel %vm461_vm3, %v2474_v56, %v2475_v55 }
  0xe7   : > { %2058 = vmatprep.subr.bf16.mxu1 %v2057_v21  ;;  %2182 = vmatprep.subr.bf16.mxu0 %v2181_v23  ;;  %v1110_v7 = vsel %vm250_vm2, %v2464_v58, %v2465_v57 }
  0xea   : > { %2060 = vmatpush3.bf16.msra.mxu1 %v2057_v21  ;;  %2184 = vmatpush3.bf16.msra.mxu0 %v2181_v23  ;;  %v2085_v21 = vpack.c.bf16 %v568_v17, %v567_v13  ;;  %v2209_v23 = vpack.c.bf16 %v1073_v0, %v1072_v18  ;;  %v1215_v13 = vld [vmem:[#allocation2 + $0x458] sm:$0xff]  ;;  %v1216_v18 = vld [vmem:[#allocation2 + $0x460] sm:$0xff]  ;;  %v1217_v0 = vld [vmem:[#allocation2 + $0x468] sm:$0xff] }
  0xeb   : > { %2062 = vmatprep.subr.bf16.mxu1 %v2061_v29  ;;  %2186 = vmatprep.subr.bf16.mxu0 %v2185_v4 }
  0xee   : > { %2064 = vmatpush3.bf16.msra.mxu1 %v2061_v29  ;;  %2188 = vmatpush3.bf16.msra.mxu0 %v2185_v4  ;;  %v572_v29 = vld [vmem:[#allocation2 + $0x1e8] sm:$0xff]  ;;  %v1076_v4 = vld [vmem:[#allocation2 + $0x3d0] sm:$0xff] }
  0xef   : > { %2066 = vmatprep.subr.bf16.mxu1 %v2065_v3  ;;  %2190 = vmatprep.subr.bf16.mxu0 %v2189_v33  ;;  %v2217_v32 = vpack.c.bf16 %v1077_v9, %v1076_v4 }
  0xf2   : > { %2068 = vmatpush3.bf16.msra.mxu1 %v2065_v3  ;;  %2192 = vmatpush3.bf16.msra.mxu0 %v2189_v33  ;;  %v574_v3 = vld [vmem:[#allocation2 + $0x1f8] sm:$0xff]  ;;  %v1078_v33 = vld [vmem:[#allocation2 + $0x3e0] sm:$0xff] }
  0xf3   : > { %2070 = vmatprep.subr.bf16.mxu1 %v2069_v20  ;;  %2194 = vmatprep.subr.bf16.mxu0 %v2193_v42  ;;  %v2097_v37 = vpack.c.bf16 %v574_v3, %v573_v1  ;;  %v2221_v38 = vpack.c.bf16 %v1079_v34, %v1078_v33 }
  0xf5   : > { %1740 = vmatmul.mubr.f32.vlgmr.msra.gmra.mrb[0].mxu1 %v463_v50  ;;  %v2459_v50 = vunpack.i.l.bf16 %v2458_v44 }
  0xf6   : > { %2072 = vmatpush3.bf16.msra.mxu1 %v2069_v20  ;;  %2196 = vmatpush3.bf16.msra.mxu0 %v2193_v42  ;;  %v2225_v20 = vpack.c.bf16 %v1081_v10, %v1080_v39  ;;  %v2229_v42 = vpack.c.bf16 %v1205_v15, %v1204_v41 }
  0xf7   : > { %2074 = vmatprep.subr.bf16.mxu1 %v2073_v53  ;;  %2198 = vmatprep.subr.bf16.mxu0 %v2197_v54  ;;  %v1109_v2 = vsel %vm250_vm2, %v2459_v50, %v2460_v47 }
  0xf8   : > { %1742 = vmatprep.mubr.f32.mxu1 %v464_v59  ;;  %v1108_v59 = vsel %vm250_vm2, %v2454_v49, %v2455_v48 }
  0xf9   : > { %1892 = vmatmul.mubr.f32.vlgmr.msra.gmra.mrb[0].mxu0 %v2796_v30  ;;  %1743 = vmatmul.mubr.f32.gmra.mrb[2].mxu1 %v465_v60  ;;  %v1107_v30 = vsel %vm250_vm2, %v2449_v12, %v2450_v11  ;;  %v2468_v60 = vpop.permute.xlu0 %2467  ;;  %v1212_v11 = vld [vmem:[#allocation2 + $0x440] sm:$0xff]  ;;  %v1213_v12 = vld [vmem:[#allocation2 + $0x448] sm:$0xff] }
  0xfa   : > { %2076 = vmatpush3.bf16.msra.mxu1 %v2073_v53  ;;  %2200 = vmatpush3.bf16.msra.mxu0 %v2197_v54  ;;  %v1208_v53 = vld [vmem:[#allocation2 + $0x420] sm:$0xff]  ;;  %v1209_v54 = vld [vmem:[#allocation2 + $0x428] sm:$0xff]  ;;  %v2470_v63 = vunpack.i.h.bf16 %v2468_v60  ;;  %v2469_v5 = vunpack.i.l.bf16 %v2468_v60 }
  0xfb   : > { %2078 = vmatprep.subr.bf16.mxu1 %v2077_v61  ;;  %2202 = vmatprep.subr.bf16.mxu0 %v2201_v62 }
  0xfc   : > { %1777 = vmatprep.mubr.f32.mxu1 %v2731_v16  ;;  %1894 = vmatprep.mubr.f32.mxu0 %v2809_v19  ;;  %v2089_v16 = vpack.c.bf16 %v570_v25, %v569_v24  ;;  %v2213_v19 = vpack.c.bf16 %v1075_v28, %v1074_v26  ;;  %v2483_v24 = vpop.permute.xlu1 %2482 }
  0xfd   : > { %1895 = vmatmul.mubr.f32.gmra.mrb[2].mxu0 %v2813_v43  ;;  %v571_v43 = vld [vmem:[#allocation2 + $0x1e0] sm:$0xff]  ;;  %v2485_v26 = vunpack.i.h.bf16 %v2483_v24  ;;  %v2484_v28 = vunpack.i.l.bf16 %v2483_v24 }
  0xfe   : > { %2080 = vmatpush3.bf16.msra.mxu1 %v2077_v61  ;;  %2204 = vmatpush3.bf16.msra.mxu0 %v2201_v62  ;;  %v2093_v31 = vpack.c.bf16 %v572_v29, %v571_v43  ;;  %v2237_v61 = vpack.c.bf16 %v1209_v54, %v1208_v53  ;;  %v1210_v62 = vld [vmem:[#allocation2 + $0x430] sm:$0xff] }
  0xff   : > { %2082 = vmatprep.subr.bf16.mxu1 %v2081_v8  ;;  %2206 = vmatprep.subr.bf16.mxu0 %v2205_v14 }
 0x100   : > { %1929 = vmatprep.mubr.f32.mxu0 %v1107_v30  ;;  %v2253_v30 = vpack.c.bf16 %v1217_v0, %v1216_v18 }
 0x102   : > { %2084 = vmatpush3.bf16.msra.mxu1 %v2081_v8  ;;  %2208 = vmatpush3.bf16.msra.mxu0 %v2205_v14  ;;  %v1236_v8 = vsel %vm461_vm3, %v2469_v5, %v2470_v63  ;;  %v1214_v14 = vld [vmem:[#allocation2 + $0x450] sm:$0xff] }
 0x103   : > { %2086 = vmatprep.subr.bf16.mxu1 %v2085_v21  ;;  %2210 = vmatprep.subr.bf16.mxu0 %v2209_v23  ;;  %v2249_v17 = vpack.c.bf16 %v1215_v13, %v1214_v14 }
 0x106   : > { %2088 = vmatpush3.bf16.msra.mxu1 %v2085_v21  ;;  %2212 = vmatpush3.bf16.msra.mxu0 %v2209_v23  ;;  %v1218_v21 = vld [vmem:[#allocation2 + $0x470] sm:$0xff]  ;;  %v1219_v23 = vld [vmem:[#allocation2 + $0x478] sm:$0xff] }
 0x107   : > { %2090 = vmatprep.subr.bf16.mxu1 %v2089_v16  ;;  %2214 = vmatprep.subr.bf16.mxu0 %v2213_v19  ;;  %v2257_v25 = vpack.c.bf16 %v1219_v23, %v1218_v21 }
 0x10a   : > { %2092 = vmatpush3.bf16.msra.mxu1 %v2089_v16  ;;  %2216 = vmatpush3.bf16.msra.mxu0 %v2213_v19  ;;  %v2478_v16 = vpop.permute.xlu0 %2477  ;;  %v1239_v19 = vsel %vm461_vm3, %v2484_v28, %v2485_v26 }
 0x10b   : > { %2094 = vmatprep.subr.bf16.mxu1 %v2093_v31  ;;  %2218 = vmatprep.subr.bf16.mxu0 %v2217_v32  ;;  %v2480_v43 = vunpack.i.h.bf16 %v2478_v16  ;;  %v2479_v29 = vunpack.i.l.bf16 %v2478_v16 }
 0x10d   : > { %v1237_v4 = vsel %vm461_vm3, %v2479_v29, %v2480_v43 }
 0x10e   : > { %2096 = vmatpush3.bf16.msra.mxu1 %v2093_v31  ;;  %2220 = vmatpush3.bf16.msra.mxu0 %v2217_v32 }
 0x10f   : > { %2098 = vmatprep.subr.bf16.mxu1 %v2097_v37  ;;  %2222 = vmatprep.subr.bf16.mxu0 %v2221_v38 }
 0x112   : > { %2100 = vmatpush3.bf16.msra.mxu1 %v2097_v37  ;;  %2224 = vmatpush3.bf16.msra.mxu0 %v2221_v38  ;;  %v1444_v38 = vld [vmem:[%s2917_s2] ss:$0 sm:$0xff] }
 0x113   : > { %2226 = vmatprep.subr.bf16.mxu0 %v2225_v20  ;;  %2261 = vmatprep.subr.bf16.mxu1 %v2229_v42 }
 0x115   : > { %1778 = vmatmul.mubr.f32.vlgmr.msra.gmra.mrb[0].mxu1 %v2743_v22  ;;  %v1211_v22 = vld [vmem:[#allocation2 + $0x438] sm:$0xff] }
 0x116   : > { %2228 = vmatpush3.bf16.msra.mxu0 %v2225_v20  ;;  %2269 = vmatpush3.bf16.msra.mxu1 %v2229_v42 }
 0x117   : > { %1780 = vmatprep.mubr.f32.mxu1 %v2749_v27  ;;  %2230 = vmatprep.subr.bf16.mxu0 %v2229_v42  ;;  %v2241_v27 = vpack.c.bf16 %v1211_v22, %v1210_v62 }
 0x118   : > { %2262 = vmatprep.subr.bf16.mxu1 %v2233_v51 }
 0x119   : > { %1781 = vmatmul.mubr.f32.gmra.mrb[2].mxu1 %v2762_v40  ;;  %1930 = vmatmul.mubr.f32.vlgmr.msra.gmra.mrb[0].mxu0 %v1108_v59  ;;  %v2245_v40 = vpack.c.bf16 %v1213_v12, %v1212_v11 }
 0x11a   : > { %2232 = vmatpush3.bf16.msra.mxu0 %v2229_v42  ;;  %2270 = vmatpush3.bf16.msra.mxu1 %v2233_v51 }
 0x11b   : > { %1932 = vmatprep.mubr.f32.mxu0 %v1109_v2  ;;  %2234 = vmatprep.subr.bf16.mxu0 %v2233_v51 }
 0x11c   : > { %2263 = vmatprep.subr.bf16.mxu1 %v2237_v61  ;;  %1970 = vmatprep.mubr.f32.mxu1 %v1238_v6 }
 0x11d   : > { %1933 = vmatmul.mubr.f32.gmra.mrb[2].mxu0 %v1110_v7 }
 0x11e   : > { %2236 = vmatpush3.bf16.msra.mxu0 %v2233_v51  ;;  %2271 = vmatpush3.bf16.msra.mxu1 %v2237_v61 }
 0x11f   : > { %2238 = vmatprep.subr.bf16.mxu0 %v2237_v61  ;;  %2264 = vmatprep.subr.bf16.mxu1 %v2241_v27 }
 0x120   : > { %1967 = vmatprep.mubr.f32.mxu0 %v1236_v8 }
 0x122   : > { %2240 = vmatpush3.bf16.msra.mxu0 %v2237_v61  ;;  %2272 = vmatpush3.bf16.msra.mxu1 %v2241_v27 }
 0x123   : > { %2242 = vmatprep.subr.bf16.mxu0 %v2241_v27  ;;  %2265 = vmatprep.subr.bf16.mxu1 %v2245_v40 }
 0x126   : > { %2244 = vmatpush3.bf16.msra.mxu0 %v2241_v27  ;;  %2273 = vmatpush3.bf16.msra.mxu1 %v2245_v40 }
 0x127   : > { %2246 = vmatprep.subr.bf16.mxu0 %v2245_v40  ;;  %2266 = vmatprep.subr.bf16.mxu1 %v2249_v17 }
 0x12a   : > { %2248 = vmatpush3.bf16.msra.mxu0 %v2245_v40  ;;  %2274 = vmatpush3.bf16.msra.mxu1 %v2249_v17 }
 0x12b   : > { %2250 = vmatprep.subr.bf16.mxu0 %v2249_v17  ;;  %2267 = vmatprep.subr.bf16.mxu1 %v2253_v30 }
 0x12e   : > { %2252 = vmatpush3.bf16.msra.mxu0 %v2249_v17  ;;  %2275 = vmatpush3.bf16.msra.mxu1 %v2253_v30 }
 0x12f   : > { %2254 = vmatprep.subr.bf16.mxu0 %v2253_v30  ;;  %2268 = vmatprep.subr.bf16.mxu1 %v2257_v25 }
 0x132   : > { %2256 = vmatpush3.bf16.msra.mxu0 %v2253_v30  ;;  %2276 = vmatpush3.bf16.msra.mxu1 %v2257_v25 }
 0x133   : > { %2258 = vmatprep.subr.bf16.mxu0 %v2257_v25 }
 0x135   : > { %1971 = vmatmul.mubr.f32.vlgmr.msra.gmra.mrb[4].mxu1 %v1239_v19 }
 0x136   : > { %2260 = vmatpush3.bf16.msra.mxu0 %v2257_v25 }
 0x139   : > { %1968 = vmatmul.mubr.f32.vlgmr.msra.gmra.mrb[0].mxu0 %v1237_v4 }
 0x1e8   : > { %v1779_v9 = vpop.f32.mrb[0].mxu1 }
 0x1e9   : > { %v656_v31 = vpop.f32.mrb[1].mxu1 }
 0x1ec   : > { %v1782_v32 = vpop.f32.mrb[2].mxu1 }
 0x1ed   : > { %v666_v1 = vpop.f32.mrb[3].mxu1 }
 0x1f0   : > { %v1934_v3 = vpop.f32.mrb[2].mxu0 }
 0x1f1   : > { %v2279_v33 = vadd.f32 %v1934_v3, %v1782_v32  ;;  %v1191_v34 = vpop.f32.mrb[3].mxu0 }
 0x1f2   : > { %v2281_v35 = vadd.f32 %v1191_v34, %v666_v1 }
 0x208   : > { %v1972_v37 = vpop.f32.mrb[4].mxu1 }
 0x209   : > { %v2280_v39 = vadd.f32 %v2279_v33, %v1972_v37  ;;  %v1320_v10 = vpop.f32.mrb[5].mxu1 }
 0x20a   : > { %v2282_v41 = vadd.f32 %v2281_v35, %v1320_v10 }
 0x20b   : > { %v1343_v15 = vadd.f32 %v2280_v39, %v1444_v38 }
 0x20c   : > { %v1342_v20 = vadd.f32 %v2282_v41, %v1444_v38  ;;  %v1969_v42 = vpop.f32.mrb[0].mxu0 }
 0x20d   : > { %1347 = vst [vmem:[%s178_s6 + $0x18] sm:$0xff] %v1343_v15  ;;  %v2277_v36 = vadd.f32 %v1969_v42, %v1779_v9  ;;  %v1310_v44 = vpop.f32.mrb[1].mxu0 }
 0x20e   : > { %1346 = vst [vmem:[%s178_s6 + $0x10] sm:$0xff] %v1342_v20  ;;  %v2278_v45 = vadd.f32 %v1310_v44, %v656_v31 }
 0x20f   : > { %v1341_v46 = vadd.f32 %v2277_v36, %v1444_v38 }
 0x210   : > { %v1340_v48 = vadd.f32 %v2278_v45, %v1444_v38 }
 0x211   : > { %1345 = vst [vmem:[%s178_s6 + $0x8] sm:$0xff] %v1341_v46 }
 0x212   : > { %1344 = vst [vmem:[%s178_s6] sm:$0xff] %v1340_v48 }
 0x213   : > { %2527 = shalt.err (!%p2524_p7)
}
 0x214   : > { %s2528_s27 = scalar_lea.hbm %s2872_s11, 512  ;;  %s2532_s26 = scalar_lea.hbm %s2918_s3, 1024 }
 0x215   : > { %p2529_p8 = scmp.ne.s32.totalorder %s2872_s11, %s2528_s27  ;;  %p2533_p1 = scmp.lt.u32.totalorder %s2872_s11, %s2918_s3 }
 0x216   : > { %p2534_p0 = scmp.lt.u32.totalorder %s2532_s26, %s2528_s27  ;;  %p2536_p6 = scmp.lt.u32.totalorder %s2528_s27, %s2872_s11 }
 0x217   : > { %p2530_p11 = pnand %p2529_p8, %p2929_p9 }
 0x218   : > { %p2535_p5 = por %p2534_p0, %p2533_p1 }
 0x219   : > { %p2531_p13 = pneg %p2530_p11 }
 0x21a   : > { %p2537_p10 = por %p2536_p6, %p2535_p5 }
 0x21c   : > { %p2538_p12 = pnand %p2537_p10, %p2531_p13 }
 0x21e   : > { %2541 = shalt.err (!%p2538_p12)
}
 0x21f   : > { %s2588_s4 = smov 128   ;;  %s2589_s5 = smov 8  }
 0x220   : > { %2314 = dma.vmem_to_hbm [thread:$0]  (%p2929_p9), %s2867_s7, 512, %s2872_s11, %s2874_s16, %s2588_s4, %s2588_s4, %s2589_s5  }
 0x221 PF: > { %p2326_p2 = scmp.ge.s32.totalorder %s2580_s15, 2  ;;  %s1377_s6 = sand.u32 1, %s2568_s12  }
 0x222   : > { %p2930_p3 = scmp.ne.s32.totalorder %s2923_s23, 0  ;;  %s1378_s8 = scalar_lea.sflag [#allocation4], %s1377_s6 }
 0x224   : > { %p2321_p4 = pnand %p2326_p2, %p2930_p3 }
 0x226   : > { %2563 = dma.done.wait (!%p2321_p4), %s1378_s8, 512  }
 0x227   : > { %2565 = vsyncadd (!%p2321_p4), %s1378_s8, 4294966784  ;;  %p14_p7 = scmp.ge.s32.totalorder %s2635_s18, 4   ;;  %s2931_s12 = smov %s2572_s13 }
 0x228   : > { %s2932_s13 = smov %s2576_s14  ;;  %s2933_s14 = smov %s2646_s21 }
 0x229   : > { %s2934_s15 = smov %s2635_s18  ;;  %16 = sbr.rel (!%p14_p7) target bundleno = 4 (0x4), region = 72 }
 0x230   :  { %1383 = vsyncpa [#allocation3], 1 }
 0x231   :  { %1385 = vsyncpa [#allocation3 + $0x1], 1 }
 0x232   :  { %1386 = vsyncpa [#allocation4], 1 }
 0x233   :  { %1388 = vsyncpa [#allocation4 + $0x1], 1 }

</bundles_post_ra>
